<compile_context>
chip_gen: v7x
topology: tpu7x:2x2x1
jax: 0.10.0
libtpu: 0.0.40
codegen_flags: <defaults>
</compile_context>

<pallas_src>
import math

import jax
import jax.numpy as jnp
from jax.experimental import pallas as pl
from jax.experimental.pallas import tpu as pltpu

_LANES = 128          # f32 vreg lane width; pad N up to a multiple of this
_SQRT2 = math.sqrt(2.0)

_VALID_TYPES = {"mae", "mse", "softmax"}


def _mtll_kernel(losses_ref, params_ref, out_ref):
    """params_ref rows: 0 = log_sd, 1 = scale, 2 = coeff (all f32, lane-padded)."""
    losses = losses_ref[...]            # (1, P) f32
    log_sd = params_ref[0:1, :]         # (1, P) f32
    scale = params_ref[1:2, :]          # (1, P) f32
    coeff = params_ref[2:3, :]          # (1, P) f32

    # Single EUP exp; everything else is VPU elementwise.
    weight = scale * jnp.exp(-coeff * log_sd)
    out_ref[...] = weight * losses + log_sd


def _mtll_pallas(losses_tile, params_tile):
    padded = losses_tile.shape[1]
    return pl.pallas_call(
        _mtll_kernel,
        out_shape=jax.ShapeDtypeStruct((1, padded), jnp.float32),
        in_specs=[
            pl.BlockSpec(memory_space=pltpu.MemorySpace.VMEM),
            pl.BlockSpec(memory_space=pltpu.MemorySpace.VMEM),
        ],
        out_specs=pl.BlockSpec(memory_space=pltpu.MemorySpace.VMEM),
    )(losses_tile, params_tile)


class MultiTaskLossLearner:
    """JAX/Pallas port of the PyTorch MultiTaskLossLearner forward pass."""

    def __init__(self, loss_types):
        self.loss_types = list(loss_types)
        for t in self.loss_types:
            if t not in _VALID_TYPES:
                raise ValueError(
                    "loss_type must be one of 'softmax', 'mae' or 'mse'.")
        n = len(self.loss_types)
        self.n = n
        padded = max(_LANES, pl.cdiv(n, _LANES) * _LANES)
        self._padded = padded

        # nn.Parameter(torch.zeros(n)) -> deterministic zeros.
        self.log_sds = jnp.zeros((n,), dtype=jnp.float32)

        # Static per-loss scale / coeff so the kernel needs only one exp and
        # no runtime selects:  weight = scale * exp(-coeff * log_sd).
        scale = jnp.array(
            [_SQRT2 if t == "mae" else (0.5 if t == "mse" else 1.0)
             for t in self.loss_types], dtype=jnp.float32)
        coeff = jnp.array(
            [1.0 if t == "mae" else 2.0 for t in self.loss_types],
            dtype=jnp.float32)
        self._scale = scale
        self._coeff = coeff

        # Hoisted constant packing: (3, padded) = [log_sd; scale; coeff].
        # Padding lanes have scale=coeff=log_sd=0 -> out = 0, sliced away.
        params = jnp.zeros((3, padded), dtype=jnp.float32)
        params = params.at[0, :n].set(self.log_sds)
        params = params.at[1, :n].set(scale)
        params = params.at[2, :n].set(coeff)
        self._params_tile = params

        @jax.jit
        def _fwd(losses_vec, params_tile):
            losses_tile = jnp.zeros((1, padded), dtype=jnp.float32)
            losses_tile = losses_tile.at[0, :n].set(
                losses_vec.astype(jnp.float32))
            out_tile = _mtll_pallas(losses_tile, params_tile)
            return out_tile[0, :n]

        self._fwd = _fwd

    def __call__(self, losses):
        # Accepts either a list/tuple of scalars or a single (N,) array.
        if isinstance(losses, (list, tuple)):
            assert len(self.loss_types) == len(losses), (
                "Specified loss types must match the number of input losses.")
            losses_vec = jnp.stack(
                [jnp.asarray(l, dtype=jnp.float32).reshape(()) for l in losses])
        else:
            losses_vec = jnp.asarray(losses, dtype=jnp.float32).reshape(-1)
            assert losses_vec.shape[0] == self.n, (
                "Specified loss types must match the number of input losses.")
        # Array-in / array-out: element i is the weighted loss for task i
        # (same values/order as the PyTorch list output).
        return self._fwd(losses_vec, self._params_tile)

    def get_weights(self):
        weights = self._scale * jnp.exp(-self._coeff * self.log_sds)
        return [float(w) for w in jax.device_get(weights)]


def _reference(loss_types, log_sds, losses):
    outs = []
    for t, s, l in zip(loss_types, log_sds, losses):
        s = float(s)
        if t == "mae":
            w = math.sqrt(2.0) * math.exp(-s)
        elif t == "mse":
            w = 0.5 * math.exp(-2.0 * s)
        else:
            w = math.exp(-2.0 * s)
        outs.append(w * float(l) + s)
    return outs


if __name__ == "__main__":
    loss_types = ["mae", "mse", "softmax", "mse"]
    model = MultiTaskLossLearner(loss_types)

    key = jax.random.PRNGKey(0)
    losses_vals = jax.random.uniform(key, (len(loss_types),), dtype=jnp.float32)
    losses = [losses_vals[i] for i in range(len(loss_types))]

    weighted = model(losses)                 # (N,) array
    weighted = jax.block_until_ready(weighted)

    ref = _reference(loss_types, model.log_sds, losses)
    got = jax.device_get(weighted)
    for g, want in zip(got, ref):
        assert abs(float(g) - want) < 1e-5, (float(g), want)

    # Also sanity-check the vectorized get_weights path.
    w_got = model.get_weights()
    w_ref = [math.sqrt(2.0), 0.5, 1.0, 0.5]
    for g, want in zip(w_got, w_ref):
        assert abs(g - want) < 1e-5, (g, want)

    print("KERNEL_OK")
</pallas_src>

<mosaic_0001>
module attributes {stable_mosaic.version = 11 : i64} {
  func.func @_mtll_kernel(%arg0: memref<1x128xf32, #tpu.memory_space<vmem>>, %arg1: memref<3x128xf32, #tpu.memory_space<vmem>>, %arg2: memref<1x128xf32, #tpu.memory_space<vmem>>) attributes {dimension_semantics = [], scalar_prefetch = 0 : i64, scratch_operands = 0 : i64, tpu.core_type = #tpu.core_type<tc>} {
    %c0 = arith.constant 0 : index
    %c0_0 = arith.constant 0 : index
    %0 = vector.load %arg0[%c0, %c0_0] : memref<1x128xf32, #tpu.memory_space<vmem>>, vector<1x128xf32>
    %c0_1 = arith.constant 0 : index
    %c0_2 = arith.constant 0 : index
    %1 = vector.load %arg1[%c0_1, %c0_2] : memref<3x128xf32, #tpu.memory_space<vmem>>, vector<1x128xf32>
    %c1 = arith.constant 1 : index
    %c0_3 = arith.constant 0 : index
    %2 = vector.load %arg1[%c1, %c0_3] : memref<3x128xf32, #tpu.memory_space<vmem>>, vector<1x128xf32>
    %c2 = arith.constant 2 : index
    %c0_4 = arith.constant 0 : index
    %3 = vector.load %arg1[%c2, %c0_4] : memref<3x128xf32, #tpu.memory_space<vmem>>, vector<1x128xf32>
    %cst = arith.constant 0.000000e+00 : f32
    %4 = vector.broadcast %cst : f32 to vector<1x128xf32>
    %5 = arith.subf %4, %3 : vector<1x128xf32>
    %6 = arith.mulf %5, %1 : vector<1x128xf32>
    %7 = math.exp %6 : vector<1x128xf32>
    %8 = arith.mulf %2, %7 : vector<1x128xf32>
    %9 = arith.mulf %8, %0 : vector<1x128xf32>
    %10 = arith.addf %9, %1 : vector<1x128xf32>
    %c0_5 = arith.constant 0 : index
    %c0_6 = arith.constant 0 : index
    %11 = vector.load %arg2[%c0_5, %c0_6] : memref<1x128xf32, #tpu.memory_space<vmem>>, vector<1x128xf32>
    tpu.vector_store %arg2[%c0_5, %c0_6], %10 {strides = array<i32>} : memref<1x128xf32, #tpu.memory_space<vmem>>, vector<1x128xf32>,
    return
  }
}

</mosaic_0001>

<bundles_post_ra>
// kernel: _fwd.1
= control target key start
LH: loop header
LB: loop body
LE: loop exit
PB: predicated region body
PF: predicated region fallthrough
CT: control target
= control target key end

     0   :  { %s59_s1 = inlined_call_operand.vmem [shape: f32[3,128], index: 1, kind: input, shape index: {}]   ;;  %s60_s0 = inlined_call_operand.vmem [shape: f32[1,128], index: 0, kind: input, shape index: {}]   ;;  %s61_s2 = inlined_call_operand.vmem [shape: f32[1,128], index: 2, kind: output, shape index: {}]  }
   0x1   :  { %v12_v0 = vld [vmem:[%s59_s1] sm:$0x1]  ;;  %v14_v1 = vld [vmem:[%s59_s1 + $0x2] sm:$0x1]  ;;  %v13_v5 = vld [vmem:[%s59_s1 + $0x1] sm:$0x1] }
   0x2   :  { %v15_v2 = vsub.f32 0.0, %v14_v1  ;;  %v11_v7 = vld [vmem:[%s60_s0] sm:$0x1] }
   0x4   :  { %v16_v3 = vmul.f32 %v15_v2, %v12_v0 }
   0x6   :  { %v17_v4 = vmul.f32 1.442695, %v16_v3 }
   0x8   :  { %27 = vpow2.f32 %v17_v4 }
  0x12   :  { %v28_v6 = vpop.eup %27 }
  0x13   :  { %v19_v8 = vmul.f32 %v28_v6, %v13_v5 }
  0x15   :  { %v20_v9 = vmul.f32 %v19_v8, %v11_v7 }
  0x17   :  { %v21_v10 = vadd.f32 %v20_v9, %v12_v0 }
  0x19   :  { %22 = vst [vmem:[%s61_s2] sm:$0x1] %v21_v10 }

</bundles_post_ra>
